<compile_context>
chip_gen: v6e
topology: v6e:2x2x1
jax: 0.10.0
libtpu: 0.0.40
codegen_flags: <defaults>
</compile_context>

<pallas_src>
import math
import functools

import jax
import jax.numpy as jnp
from jax.experimental import pallas as pl
from jax.experimental.pallas import tpu as pltpu


def make_positional_encoding(d_model: int, seq_len: int):
    """Builds the sinusoidal PE buffer exactly like the PyTorch __init__."""
    position = jnp.arange(seq_len, dtype=jnp.float32)[:, None]                    # (S, 1)
    div_term = jnp.exp(jnp.arange(0, d_model, 2, dtype=jnp.float32)
                       * (-math.log(10000.0) / d_model))                          # (D/2,)
    pe = jnp.zeros((seq_len, d_model), dtype=jnp.float32)
    pe = pe.at[:, 0::2].set(jnp.sin(position * div_term))
    pe = pe.at[:, 1::2].set(jnp.cos(position * div_term))
    return pe[None, :, :]                                                         # (1, S, D)


def _pe_add_kernel(x_ref, pe_ref, o_ref):
    """Eval mode: out = x + pe."""
    o_ref[...] = (x_ref[...] + pe_ref[...]).astype(o_ref.dtype)


def _pe_add_dropout_kernel(x_ref, pe_ref, bits_ref, o_ref, *, threshold, scale):
    """Training mode: out = inverted-dropout(x + pe).

    keep element iff bits >= threshold, where threshold = round(p * 2^32),
    so P(keep) = 1 - p; kept elements scaled by 1/(1-p) (PyTorch semantics).
    """
    y = x_ref[...] + pe_ref[...]
    keep = bits_ref[...] >= jnp.uint32(threshold)
    y = jnp.where(keep, y * scale, jnp.zeros_like(y))
    o_ref[...] = y.astype(o_ref.dtype)


def _pick_row_tile(S: int, D: int, x_itemsize: int, with_bits: bool) -> int:
    """Largest row tile (multiple of 8, dividing S) whose double-buffered
    working set (x + pe + out [+ uint32 bits]) stays under ~24 MiB VMEM."""
    per_row = D * (3 * x_itemsize + (4 if with_bits else 0)) * 2  # x2 double-buffer
    budget = 24 * 1024 * 1024
    for ts in (1024, 512, 256, 128, 64, 32, 16, 8):
        if S % ts == 0 and ts * per_row <= budget:
            return ts
    return S  # small / oddly-shaped S: take the whole axis (block == full dim)


def positional_encoding_forward(x, pe, *, dropout_p: float, rng=None,
                                training: bool = True):
    """x: (B, S, D); pe: (1, S_max, D). Returns dropout(x + pe[:, :S, :])."""
    B, S, D = x.shape
    pe_sliced = pe[:, :S, :].astype(x.dtype)          # ship pe in x.dtype
    p = float(dropout_p) if training else 0.0

    TS = _pick_row_tile(S, D, jnp.dtype(x.dtype).itemsize, with_bits=(p > 0.0))
    grid = (pl.cdiv(S, TS), B)                        # batch innermost -> pe stays resident

    x_spec = pl.BlockSpec((1, TS, D), lambda s, b: (b, s, 0))
    pe_spec = pl.BlockSpec((1, TS, D), lambda s, b: (0, s, 0))   # block idx constant over b
    out_spec = pl.BlockSpec((1, TS, D), lambda s, b: (b, s, 0))

    cparams = pltpu.CompilerParams(
        dimension_semantics=("parallel", "parallel"),  # independent blocks; v7x 2-TC sharding
        vmem_limit_bytes=64 * 1024 * 1024,
    )

    if p > 0.0:
        if rng is None:
            rng = jax.random.PRNGKey(0)
        bits = jax.random.bits(rng, (B, S, D), dtype=jnp.uint32)
        threshold = min(int(round(p * 4294967296.0)), 4294967295)
        scale = 1.0 / (1.0 - p)
        kernel = functools.partial(_pe_add_dropout_kernel,
                                   threshold=threshold, scale=scale)
        return pl.pallas_call(
            kernel,
            out_shape=jax.ShapeDtypeStruct((B, S, D), x.dtype),
            grid=grid,
            in_specs=[x_spec, pe_spec, x_spec],   # bits tiled like x
            out_specs=out_spec,
            compiler_params=cparams,
        )(x, pe_sliced, bits)

    return pl.pallas_call(
        _pe_add_kernel,
        out_shape=jax.ShapeDtypeStruct((B, S, D), x.dtype),
        grid=grid,
        in_specs=[x_spec, pe_spec],
        out_specs=out_spec,
        compiler_params=cparams,
    )(x, pe_sliced)


if __name__ == "__main__":
    d_model, seq_len, dropout = 32, 8, 0.1
    batch = 2

    pe = make_positional_encoding(d_model, seq_len)

    key = jax.random.PRNGKey(0)
    kx, kd = jax.random.split(key)
    x = jax.random.normal(kx, (batch, seq_len, d_model), dtype=jnp.float32)

    # Training-mode forward (with dropout, deterministic rng).
    out_train = positional_encoding_forward(x, pe, dropout_p=dropout, rng=kd,
                                            training=True)
    jax.block_until_ready(out_train)

    # Eval-mode forward (dropout is identity) -- check against plain JAX reference.
    out_eval = positional_encoding_forward(x, pe, dropout_p=dropout, training=False)
    jax.block_until_ready(out_eval)

    ref = x + pe[:, :seq_len, :]
    assert jnp.allclose(out_eval, ref, atol=1e-6), "eval mismatch vs reference"
    assert out_train.shape == x.shape and out_train.dtype == x.dtype

    # Training output: every element is either 0 (dropped) or (x+pe)/(1-p) (kept).
    scaled = ref / (1.0 - dropout)
    ok = jnp.logical_or(jnp.isclose(out_train, 0.0, atol=1e-6),
                        jnp.isclose(out_train, scaled, atol=1e-5))
    assert bool(jnp.all(ok)), "training dropout values inconsistent"

    print("KERNEL_OK")
</pallas_src>

<mosaic_0001>
module attributes {stable_mosaic.version = 11 : i64} {
  func.func @_pe_add_dropout_kernel(%arg0: i32, %arg1: i32, %arg2: memref<1x8x32xf32, #tpu.memory_space<vmem>>, %arg3: memref<1x8x32xf32, #tpu.memory_space<vmem>>, %arg4: memref<1x8x32xi32, #tpu.memory_space<vmem>>, %arg5: memref<1x8x32xf32, #tpu.memory_space<vmem>>) attributes {dimension_semantics = [#tpu.dimension_semantics<parallel>, #tpu.dimension_semantics<parallel>], iteration_bounds = array<i64: 1, 2>, scalar_prefetch = 0 : i64, scratch_operands = 0 : i64, tpu.core_type = #tpu.core_type<tc>, window_params = [{transform_indices = @transform_0, window_bounds = array<i64: 1, 8, 32>}, {transform_indices = @transform_1, window_bounds = array<i64: 1, 8, 32>}, {transform_indices = @transform_2, window_bounds = array<i64: 1, 8, 32>}, {transform_indices = @transform_3, window_bounds = array<i64: 1, 8, 32>}]} {
    %c0 = arith.constant 0 : index
    %c0_0 = arith.constant 0 : index
    %c0_1 = arith.constant 0 : index
    %0 = vector.load %arg2[%c0, %c0_0, %c0_1] : memref<1x8x32xf32, #tpu.memory_space<vmem>>, vector<1x8x32xf32>
    %c0_2 = arith.constant 0 : index
    %c0_3 = arith.constant 0 : index
    %c0_4 = arith.constant 0 : index
    %1 = vector.load %arg3[%c0_2, %c0_3, %c0_4] : memref<1x8x32xf32, #tpu.memory_space<vmem>>, vector<1x8x32xf32>
    %2 = arith.addf %0, %1 : vector<1x8x32xf32>
    %c0_5 = arith.constant 0 : index
    %c0_6 = arith.constant 0 : index
    %c0_7 = arith.constant 0 : index
    %3 = vector.load %arg4[%c0_5, %c0_6, %c0_7] : memref<1x8x32xi32, #tpu.memory_space<vmem>>, vector<1x8x32xi32>
    %c429496730_i32 = arith.constant 429496730 : i32
    %4 = vector.broadcast %c429496730_i32 : i32 to vector<1x8x32xi32>
    %5 = arith.cmpi uge, %3, %4 : vector<1x8x32xi32>
    %cst = arith.constant 1.11111116 : f32
    %6 = vector.broadcast %cst : f32 to vector<1x8x32xf32>
    %7 = arith.mulf %2, %6 : vector<1x8x32xf32>
    %cst_8 = arith.constant 0.000000e+00 : f32
    %8 = vector.broadcast %cst_8 : f32 to vector<1x8x32xf32>
    %9 = arith.select %5, %7, %8 : vector<1x8x32xi1>, vector<1x8x32xf32>
    %c0_9 = arith.constant 0 : index
    %c0_10 = arith.constant 0 : index
    %c0_11 = arith.constant 0 : index
    %10 = vector.load %arg5[%c0_9, %c0_10, %c0_11] : memref<1x8x32xf32, #tpu.memory_space<vmem>>, vector<1x8x32xf32>
    tpu.vector_store %arg5[%c0_9, %c0_10, %c0_11], %9 {strides = array<i32>} : memref<1x8x32xf32, #tpu.memory_space<vmem>>, vector<1x8x32xf32>,
    return
  }
  func.func @transform_0(%arg0: i32, %arg1: i32) -> (i32, i32, i32) {
    %c0_i32 = arith.constant 0 : i32
    %c0_i32_0 = arith.constant 0 : i32
    return %arg1, %arg0, %c0_i32 : i32, i32, i32
  }
  func.func @transform_1(%arg0: i32, %arg1: i32) -> (i32, i32, i32) {
    %c0_i32 = arith.constant 0 : i32
    %c0_i32_0 = arith.constant 0 : i32
    %c0_i32_1 = arith.constant 0 : i32
    return %c0_i32, %arg0, %c0_i32_0 : i32, i32, i32
  }
  func.func @transform_2(%arg0: i32, %arg1: i32) -> (i32, i32, i32) {
    %c0_i32 = arith.constant 0 : i32
    %c0_i32_0 = arith.constant 0 : i32
    return %arg1, %arg0, %c0_i32 : i32, i32, i32
  }
  func.func @transform_3(%arg0: i32, %arg1: i32) -> (i32, i32, i32) {
    %c0_i32 = arith.constant 0 : i32
    %c0_i32_0 = arith.constant 0 : i32
    return %arg1, %arg0, %c0_i32 : i32, i32, i32
  }
}

</mosaic_0001>

<bundles_post_ra>
// kernel: tpu_custom_call.1
= control target key start
LH: loop header
LB: loop body
LE: loop exit
PB: predicated region body
PF: predicated region fallthrough
CT: control target
= control target key end

     0   :  { %8 = vsyncpa [#allocation3], 0  ;;  %s875_s0 = inlined_call_operand.hbm [shape: f32[2,8,32], index: 0, kind: input, shape index: {}]   ;;  %s876_s1 = inlined_call_operand.hbm [shape: f32[1,8,32], index: 1, kind: input, shape index: {}]   ;;  %s877_s2 = inlined_call_operand.hbm [shape: u32[2,8,32], index: 2, kind: input, shape index: {}]   ;;  %s878_s3 = inlined_call_operand.hbm [shape: f32[2,8,32], index: 3, kind: output, shape index: {}]  }
   0x1   :  { %10 = vsyncpa [#allocation3 + $0x1], 0 }
   0x2   :  { %11 = vsyncpa [#allocation6], 0 }
   0x3   :  { %12 = vsyncpa [#allocation4], 0 }
   0x4   :  { %14 = vsyncpa [#allocation4 + $0x1], 0  ;;  %s689_s12 = smov 0   ;;  %s691_s13 = smov 0  }
   0x5   :  { %s693_s14 = smov 0   ;;  %s695_s15 = smov 0  }
   0x6   :  { %s697_s16 = smov 0   ;;  %s699_s17 = smov 0  }
   0x7 LB: > { %s29_s18 = sadd.s32 1, %s659_s16  ;;  %s41_s19 = sadd.s32 1, %s651_s14  ;;  %s663_s17 = sphi %s699_s17, %s20_s17   ;;  %s659_s16 = sphi %s697_s16, %s899_s16   ;;  %s655_s15 = sphi %s695_s15, %s898_s15   ;;  %s651_s14 = sphi %s693_s14, %s897_s14   ;;  %s647_s13 = sphi %s691_s13, %s896_s13   ;;  %s643_s12 = sphi %s689_s12, %s895_s12  }
   0x8   : > { %p30_p0 = scmp.ge.s32.totalorder %s29_s18, 2  ;;  %p48_p1 = scmp.ne.s32.totalorder %s651_s14, %s647_s13 }
   0x9   : > { %p49_p2 = scmp.eq.s32.totalorder %s663_s17, 0  ;;  %p441_p5 = scmp.lt.s32.totalorder %s663_s17, 2 }
   0xa   : > { %s901_s18 = smov (%p30_p0, %s29_s18), 0  ;;  %s173_s21 = sand.u32 1, %s663_s17  }
   0xb   : > { %p50_p4 = por %p49_p2, %p48_p1  ;;  %s36_s20 = ssub.s32 %s659_s16, %s901_s18 }
   0xc   : > { %p39_p6 = scmp.eq.s32.totalorder %s36_s20, 0  ;;  %s175_s22 = sand.u32 1, %s651_s14  }
   0xd   : > { %s403_s23 = sshll.u32 %s659_s16, 7  ;;  %s739_s25 = sshll.u32 %s175_s22, 3 }
   0xe   : > { %s737_s24 = scalar_select %p39_p6, %s651_s14, %s41_s19  }
   0xf   : > { %s183_s28 = scalar_lea.hbm %s875_s0, %s403_s23  ;;  %p746_p7 = pnand %p441_p5, %p50_p4 }
  0x10   : > { %s177_s30 = scalar_lea.vmem [#allocation2], %s739_s25  ;;  %s751_s5 = scalar_lea.sflag [#allocation3], %s173_s21 }
  0x11   : > { %s185_s4 = sshll.u32 %s177_s30, 4  ;;  %p495_p8 = pneg %p746_p7  ;;  %s186_s4 = int_to_ptr.vmem [resolvable:$true] %s185_s4 }
  0x12   : > { %s506_s6 = scalar_lea.vmem %s186_s4, 128  ;;  %s665_s7 = smov [#allocation2]  }
  0x13   : > { %p507_p9 = scmp.ne.s32.totalorder %s186_s4, %s506_s6  ;;  %s511_s8 = sshll.u32 %s665_s7, 4  ;;  %s512_s8 = int_to_ptr.vmem [resolvable:$false] %s511_s8 }
  0x14   : > { %s513_s9 = scalar_lea.vmem %s512_s8, 256  ;;  %p514_p12 = scmp.lt.s32.totalorder %s186_s4, %s512_s8 }
  0x15   : > { %p509_p10 = pnand %p507_p9, %p495_p8  ;;  %p515_p13 = scmp.lt.s32.totalorder %s513_s9, %s506_s6 }
  0x17   : > { %p510_p11 = pneg %p509_p10  ;;  %p516_p0 = por %p515_p13, %p514_p12 }
  0x19   : > { %p517_p2 = pnand %p516_p0, %p510_p11 }
  0x1b   : > { %520 = shalt.err (!%p517_p2)
}
  0x1c   : > { %432 = dma.hbm_to_vmem [thread:$0]  (!%p746_p7), %s183_s28, 128, %s186_s4, %s751_s5  }
  0x1d   : > { %s762_s10 = sadd.s32 4294967295, %s663_s17   ;;  %s398_s11 = sadd.s32 4294967294, %s663_s17  }
  0x1e   : > { %p54_p4 = scmp.ne.s32.totalorder %s647_s13, %s643_s12  ;;  %p879_p5 = scmp.eq.s32.totalorder %s762_s10, 0 }
  0x1f   : > { %p134_p6 = scmp.eq.s32.totalorder %s762_s10, 1  ;;  %p140_p9 = scmp.eq.s32.totalorder %s398_s11, 1 }
  0x20   : > { %p399_p10 = scmp.ge.s32.totalorder %s663_s17, 1  ;;  %p772_p11 = por %p879_p5, %p54_p4 }
  0x21   : > { %p779_p12 = por %p134_p6, %p48_p1  ;;  %p783_p13 = por %p140_p9, %p54_p4 }
  0x22   : > { %s883_s19 = scalar_select %p772_p11, 1, 0 }
  0x23   : > { %s884_s20 = scalar_select %p779_p12, 1, 0 }
  0x24   : > { %s885_s21 = scalar_select %p783_p13, 1, 0 }
  0x25   : > { %p147_p0 = scmp.lt.s32.totalorder %s663_s17, 3  ;;  %s202_s27 = scalar_lea.hbm %s877_s2, %s403_s23 }
  0x26   : > { %s666_s30 = smov [#allocation5]   ;;  %s196_s6 = scalar_lea.vmem [#allocation7], %s739_s25 }
  0x27   : > { %p793_p2 = pnand %p399_p10, %p147_p0  ;;  %s162_s4 = sshll.u32 %s666_s30, 4  ;;  %s163_s4 = int_to_ptr.vmem [resolvable:$true] %s162_s4 }
  0x28   : > { %s204_s7 = sshll.u32 %s196_s6, 4  ;;  %s667_s9 = smov [#allocation7]   ;;  %s205_s7 = int_to_ptr.vmem [resolvable:$true] %s204_s7 }
  0x29   : > { %s534_s8 = scalar_lea.vmem %s205_s7, 128  ;;  %s539_s23 = sshll.u32 %s667_s9, 4  ;;  %s540_s23 = int_to_ptr.vmem [resolvable:$false] %s539_s23 }
  0x2a   : > { %p535_p4 = scmp.ne.s32.totalorder %s205_s7, %s534_s8  ;;  %s541_s11 = scalar_lea.vmem %s540_s23, 256 }
  0x2b   : > { %p542_p10 = scmp.lt.s32.totalorder %s205_s7, %s540_s23  ;;  %p543_p0 = scmp.lt.s32.totalorder %s541_s11, %s534_s8 }
  0x2c   : > { %p537_p6 = pnand %p535_p4, %p495_p8 }
  0x2d   : > { %p544_p3 = por %p543_p0, %p542_p10 }
  0x2e   : > { %p538_p9 = pneg %p537_p6 }
  0x30   : > { %p545_p5 = pnand %p544_p3, %p538_p9 }
  0x32   : > { %548 = shalt.err (!%p545_p5)
}
  0x33   : > { %435 = dma.hbm_to_vmem [thread:$0]  (!%p746_p7), %s202_s27, 128, %s205_s7, %s751_s5  }
  0x34   : > { %p887_p1 = scmp.eq.s32.totalorder %s762_s10, 0  ;;  %p888_p8 = pneg %p793_p2 }
  0x35   : > { %s560_s25 = scalar_lea.vmem %s163_s4, 128  ;;  %p568_p0 = scmp.lt.s32.totalorder %s163_s4, %s163_s4 }
  0x36   : > { %p426_p4 = pnand %p888_p8, %p887_p1  ;;  %p561_p13 = scmp.ne.s32.totalorder %s163_s4, %s560_s25 }
  0x37   : > { %p569_p10 = scmp.lt.s32.totalorder %s560_s25, %s560_s25 }
  0x38   : > { %p551_p6 = pneg %p426_p4 }
  0x39   : > { %p570_p3 = por %p569_p10, %p568_p0 }
  0x3a   : > { %p563_p12 = pnand %p561_p13, %p551_p6 }
  0x3c   : > { %p564_p11 = pneg %p563_p12 }
  0x3e   : > { %p571_p5 = pnand %p570_p3, %p564_p11 }
  0x40   : > { %574 = shalt.err (!%p571_p5)
}
  0x41   : > { %428 = dma.hbm_to_vmem [thread:$0]  (!%p426_p4), %s876_s1, 128, %s163_s4, [#allocation6]  }
  0x42   : > { %213 = sbr.rel (%p793_p2) target bundleno = 103 (0x67), region = 32  ;;  %s215_s5 = sand.u32 (!%p793_p2), 1, %s762_s10  }
  0x43   : > { %s217_s26 = sand.u32 (!%p793_p2), 1, %s647_s13   ;;  %s216_s30 = scalar_lea.sflag (!%p793_p2), [#allocation3], %s215_s5 }
  0x44   : > { %s407_s27 = sshll.u32 (!%p793_p2), %s217_s26, 3  ;;  %p889_p7 = scmp.ne.s32.totalorder (!%p793_p2), %s883_s19, 0 }
  0x45   : > { %s219_s6 = scalar_lea.vmem (!%p793_p2), [#allocation2], %s407_s27 }
  0x47   : > { %626 = dma.done.wait (%p889_p7), %s216_s30, 128  }
  0x48   : > { %628 = vsyncadd (%p889_p7), %s216_s30, 4294967168  ;;  %p890_p11 = scmp.eq.s32.totalorder %s762_s10, 0 }
  0x4a   : > { %630 = dma.done.wait (%p890_p11), [#allocation6], 128   ;;  %p891_p12 = pmov %p890_p11 }
  0x4b   : > { %s232_s28 = scalar_lea.vmem [#allocation7], %s407_s27 }
  0x4c   : > { %632 = vsyncadd (%p891_p12), [#allocation6], 4294967168 }
  0x4d   : > { %634 = dma.done.wait (%p889_p7), %s216_s30, 128  }
  0x4e   : > { %636 = vsyncadd (%p889_p7), %s216_s30, 4294967168  ;;  %v260_v0 = vld [vmem:[%s219_s6] sm:$0xff]  ;;  %v261_v1 = vld [vmem:[#allocation5] sm:$0xff]  ;;  %s259_s4 = scalar_lea.vmem [#allocation8], %s407_s27  ;;  %s412_s8 = sshll.u32 %s655_s15, 7  ;;  %vm267_vm1 = vcmask 261120  }
  0x4f   : > { %v263_v2 = vld [vmem:[%s232_s28] sm:$0xff]  ;;  %v262_v3 = vadd.f32 %v261_v1, %v260_v0  ;;  %s284_s7 = sshll.u32 %s259_s4, 4  ;;  %s282_s19 = scalar_lea.hbm %s878_s3, %s412_s8  ;;  %s831_s7 = int_to_ptr.vmem [resolvable:$true] %s284_s7 }
  0x50   : > { %vm264_vm0 = vcmp.ge.u32.totalorder %v263_v2, 429496730  ;;  %s270_s23 = scalar_lea.sflag [#allocation4], %s217_s26  ;;  %s575_s11 = scalar_lea.vmem %s831_s7, 128 }
  0x51   : > { %v265_v4 = vmul.f32 1.1111112, %v262_v3  ;;  %p576_p13 = scmp.ne.s32.totalorder %s831_s7, %s575_s11  ;;  %p892_p2 = scmp.ne.s32.totalorder %s884_s20, 0 }
  0x52   : > { %s668_s15 = smov [#allocation8]  }
  0x53   : > { %v266_v5 = vsel %vm264_vm0, %v265_v4, 0.0  ;;  %p577_p1 = pnand %p576_p13, %p892_p2  ;;  %s579_s25 = sshll.u32 %s668_s15, 4  ;;  %s580_s25 = int_to_ptr.vmem [resolvable:$false] %s579_s25 }
  0x54   : > { %268 = vst.msk [vmem:[%s259_s4] sm:$0xff] %vm267_vm1, %v266_v5  ;;  %s581_s29 = scalar_lea.vmem %s580_s25, 256  ;;  %p582_p8 = scmp.lt.s32.totalorder %s831_s7, %s580_s25 }
  0x55   : > { %p578_p9 = pneg %p577_p1  ;;  %p583_p4 = scmp.lt.s32.totalorder %s581_s29, %s575_s11 }
  0x57   : > { %p584_p6 = por %p583_p4, %p582_p8 }
  0x59   : > { %p585_p0 = pnand %p584_p6, %p578_p9 }
  0x5b   : > { %588 = shalt.err (!%p585_p0)
}
  0x5c   : > { %s589_s22 = scalar_lea.hbm %s282_s19, 128  ;;  %s593_s27 = scalar_lea.hbm %s878_s3, 256 }
  0x5d   : > { %p590_p10 = scmp.ne.s32.totalorder %s282_s19, %s589_s22  ;;  %p594_p7 = scmp.lt.s32.totalorder %s282_s19, %s878_s3 }
  0x5e   : > { %p595_p11 = scmp.lt.s32.totalorder %s593_s27, %s589_s22 }
  0x5f   : > { %p591_p3 = pnand %p590_p10, %p892_p2 }
  0x60   : > { %p596_p12 = por %p595_p11, %p594_p7 }
  0x61   : > { %p592_p5 = pneg %p591_p3 }
  0x63   : > { %p597_p13 = pnand %p596_p12, %p592_p5 }
  0x65   : > { %600 = shalt.err (!%p597_p13)
}
  0x66   : > { %423 = dma.vmem_to_hbm [thread:$0]  (%p892_p2), %s831_s7, 128, %s282_s19, %s270_s23  }
  0x67 PF: > { %s296_s28 = sand.u32 1, %s643_s12   ;;  %p893_p1 = scmp.ne.s32.totalorder %s885_s21, 0 }
  0x68   : > { %p894_p9 = scmp.ge.s32.totalorder %s663_s17, 2  ;;  %s297_s4 = scalar_lea.sflag [#allocation4], %s296_s28 }
  0x6a   : > { %p437_p8 = pnand %p894_p9, %p893_p1 }
  0x6c   : > { %p438_p4 = pneg %p437_p8 }
  0x6e   : > { %638 = dma.done.wait (%p438_p4), %s297_s4, 128  }
  0x6f   : > { %640 = vsyncadd (%p438_p4), %s297_s4, 4294967168  ;;  %s20_s17 = sadd.s32 1, %s663_s17   ;;  %s895_s12 = smov %s647_s13 }
  0x70   : > { %p17_p6 = scmp.ge.s32.totalorder %s20_s17, 4   ;;  %s896_s13 = smov %s651_s14 }
  0x71   : > { %s897_s14 = smov %s737_s24  ;;  %s898_s15 = smov %s659_s16 }
  0x72   : > { %s899_s16 = smov %s901_s18  ;;  %19 = sbr.rel (!%p17_p6) target bundleno = 7 (0x7), region = 93 }
  0x77   :  { %302 = vsyncpa [#allocation3], 1 }
  0x78   :  { %304 = vsyncpa [#allocation3 + $0x1], 1 }
  0x79   :  { %305 = vsyncpa [#allocation6], 1 }
  0x7a   :  { %306 = vsyncpa [#allocation4], 1 }
  0x7b   :  { %308 = vsyncpa [#allocation4 + $0x1], 1 }

</bundles_post_ra>
